<compile_context>
chip_gen: v7x
topology: tpu7x:2x2x1
jax: 0.10.0
libtpu: 0.0.40
codegen_flags: <defaults>
</compile_context>

<pallas_src>
import math
from functools import partial

import jax
import jax.numpy as jnp
from jax.experimental import pallas as pl
from jax.experimental.pallas import tpu as pltpu


# ----------------------------------------------------------------- utilities --

def _round_up(x, m):
    return ((x + m - 1) // m) * m


def _pad128(x):
    return _round_up(x, 128)


class _KeyGen:
    def __init__(self, key):
        self._key = key

    def __call__(self):
        self._key, sub = jax.random.split(self._key)
        return sub


def _torch_linear(kg, in_f, out_f):
    # Mirrors nn.Linear default init: U(-1/sqrt(in), 1/sqrt(in)) for w and b.
    bound = 1.0 / math.sqrt(in_f)
    w = jax.random.uniform(kg(), (out_f, in_f), jnp.float32, -bound, bound)
    b = jax.random.uniform(kg(), (out_f,), jnp.float32, -bound, bound)
    return {"w": w, "b": b}


# -------------------------------------------------------------- param builders --

def _pad_layer(layer, Ip=None, Op=None):
    # Torch layout w:(O, I), b:(O,)  ->  padded GEMM layout w:(Ip, Op) bf16,
    # b:(1, Op) f32.  Zero rows/cols keep the math exact.
    w, b = layer["w"], layer["b"]
    O, I = w.shape
    Ip = _pad128(I) if Ip is None else Ip
    Op = _pad128(O) if Op is None else Op
    wp = jnp.zeros((Ip, Op), jnp.float32).at[:I, :O].set(w.T)
    bp = jnp.zeros((1, Op), jnp.float32).at[0, :O].set(b)
    return {"w": wp.astype(jnp.bfloat16), "b": bp}


def init_dense_network(key, input_dim, dense_layers, sex_dcs,
                       explicit_sex_classifier=None):
    """Returns (pallas_params, raw_params).

    pallas_params: 128-lane-padded bf16 weights / f32 biases consumed by the
                   fused Pallas kernel.
    raw_params:    unpadded f32 torch-layout weights (used only by the pure-JAX
                   reference check in __main__).
    """
    kg = _KeyGen(key)
    D, S = input_dim, sex_dcs
    Dp, Sp = _pad128(D), _pad128(S)

    raw = {}
    raw["fc_gender"] = _torch_linear(kg, 1, S)
    sizes = [D + S] + list(dense_layers)
    raw["dense"] = [_torch_linear(kg, sizes[i], sizes[i + 1])
                    for i in range(len(sizes) - 1)]
    raw["fc_boneage"] = _torch_linear(kg, dense_layers[-1], 1)
    if explicit_sex_classifier:
        sc_sizes = [D] + list(explicit_sex_classifier)
        raw["sex_classifier"] = [_torch_linear(kg, sc_sizes[i], sc_sizes[i + 1])
                                 for i in range(len(sc_sizes) - 1)]
        raw["fc_sex"] = _torch_linear(kg, sc_sizes[-1], 1)
    else:
        raw["fc_sex"] = _torch_linear(kg, dense_layers[-1], 1)

    p = {}
    # fc_gender_in consumes the 128-lane "male" slab (only row 0 is real).
    p["fc_gender"] = _pad_layer(raw["fc_gender"], Ip=128)

    # First dense block consumes the concatenated [features | gender-embedding]
    # padded slabs: original rows 0..D-1 -> positions 0..D-1, rows D..D+S-1 ->
    # positions Dp..Dp+S-1, everything else zero.
    d0 = raw["dense"][0]
    O0 = d0["w"].shape[0]
    O0p = _pad128(O0)
    w0p = jnp.zeros((Dp + Sp, O0p), jnp.float32)
    w0p = w0p.at[:D, :O0].set(d0["w"].T[:D])
    w0p = w0p.at[Dp:Dp + S, :O0].set(d0["w"].T[D:])
    b0p = jnp.zeros((1, O0p), jnp.float32).at[0, :O0].set(d0["b"])
    dense = [{"w": w0p.astype(jnp.bfloat16), "b": b0p}]
    for layer in raw["dense"][1:]:
        dense.append(_pad_layer(layer))
    p["dense"] = dense

    p["fc_boneage"] = _pad_layer(raw["fc_boneage"], Op=128)   # 1 -> 128 lanes
    p["fc_sex"] = _pad_layer(raw["fc_sex"], Op=128)           # 1 -> 128 lanes
    if explicit_sex_classifier:
        p["sex_classifier"] = [_pad_layer(l) for l in raw["sex_classifier"]]

    return p, raw


# --------------------------------------------------------- fused forward kernel --

@partial(jax.jit, static_argnames=("correct_sex",))
def dense_network_forward(params, features, male, *, correct_sex=True):
    """Fused DenseNetwork forward. Returns (age_hat (B,1), sex_hat (B,1))."""
    has_explicit = "sex_classifier" in params
    male_given = male is not None
    if not has_explicit and not male_given:
        raise ValueError("`male` is required when there is no explicit sex classifier")
    use_given_male = (not has_explicit) or (correct_sex and male_given)

    B, D = features.shape
    Dp = _pad128(D)
    B_pad = _round_up(max(B, 1), 16)      # bf16 sublane packing is (16, 128)

    # One-time lane/sublane padding of the raw inputs (zeros are exact:
    # padded weight rows/cols are zero too).
    feats_p = jnp.zeros((B_pad, Dp), jnp.bfloat16).at[:B, :D].set(
        features.astype(jnp.bfloat16))
    if male_given:
        male_p = jnp.zeros((B_pad, 128), jnp.bfloat16).at[:B, :1].set(
            male.astype(jnp.bfloat16))
    else:
        male_p = jnp.zeros((B_pad, 128), jnp.bfloat16)

    leaves, treedef = jax.tree_util.tree_flatten(params)
    n_leaves = len(leaves)

    def kernel(*refs):
        feat_ref, male_ref = refs[0], refs[1]
        p = jax.tree_util.tree_unflatten(treedef, refs[2:2 + n_leaves])
        age_ref, sex_ref = refs[2 + n_leaves], refs[3 + n_leaves]

        def linear(x, layer, relu):
            # bf16 x bf16 on the MXU with f32 accumulation; f32 bias + ReLU on
            # the VPU.  (nn.Dropout between linear and ReLU is identity here.)
            # TODO(synk): train-mode dropout (pltpu.prng_random_bits mask) not
            # implemented; forward uses inference-mode identity dropout.
            y = jnp.dot(x, layer["w"][...], preferred_element_type=jnp.float32)
            y = y + layer["b"][...]
            if relu:
                y = jnp.maximum(y, 0.0)
            return y

        feats = feat_ref[...]                               # bf16 (B_pad, Dp)
        sex_logits = None

        if has_explicit:
            h = feats
            for layer in p["sex_classifier"]:
                h = linear(h, layer, relu=True).astype(jnp.bfloat16)
            sex_logits = linear(h, p["fc_sex"], relu=False)  # f32 (B_pad, 128), col 0 real
            if use_given_male:
                male_in = male_ref[...]
            else:
                # male = sex_hat.detach(); padded lanes 1..127 are exactly zero.
                male_in = sex_logits.astype(jnp.bfloat16)
        else:
            male_in = male_ref[...]

        m = linear(male_in, p["fc_gender"], relu=True).astype(jnp.bfloat16)  # (B_pad, Sp)
        x = jnp.concatenate([feats, m], axis=-1)                             # (B_pad, Dp+Sp)
        for layer in p["dense"]:
            x = linear(x, layer, relu=True).astype(jnp.bfloat16)

        age_logits = linear(x, p["fc_boneage"], relu=False)                  # (B_pad, 128)
        if not has_explicit:
            sex_logits = linear(x, p["fc_sex"], relu=False)

        age_ref[...] = age_logits      # full, unmasked 128-lane stores
        sex_ref[...] = sex_logits

    age_full, sex_full = pl.pallas_call(
        kernel,
        out_shape=(jax.ShapeDtypeStruct((B_pad, 128), jnp.float32),
                   jax.ShapeDtypeStruct((B_pad, 128), jnp.float32)),
        compiler_params=pltpu.CompilerParams(
            vmem_limit_bytes=32 * 1024 * 1024),   # fits v7x's 64 MiB VMEM
    )(feats_p, male_p, *leaves)

    return age_full[:B, :1], sex_full[:B, :1]


# ----------------------------------------------------- pure-JAX reference (f32) --

def reference_forward(raw, features, male, *, correct_sex=True):
    act = lambda v: jnp.maximum(v, 0.0)
    lin = lambda layer, v: v @ layer["w"].T + layer["b"]
    sex_hat = None
    if "sex_classifier" in raw:
        h = features
        for layer in raw["sex_classifier"]:
            h = act(lin(layer, h))
        sex_hat = lin(raw["fc_sex"], h)
        m = male if (correct_sex and male is not None) else sex_hat
    else:
        m = male
    m = act(lin(raw["fc_gender"], m))
    x = jnp.concatenate([features, m], axis=-1)
    for layer in raw["dense"]:
        x = act(lin(layer, x))
    age_hat = lin(raw["fc_boneage"], x)
    if "sex_classifier" not in raw:
        sex_hat = lin(raw["fc_sex"], x)
    return age_hat, sex_hat


# -------------------------------------------------------------------- __main__ --

if __name__ == "__main__":
    key = jax.random.PRNGKey(0)
    k_p1, k_p2, k_f, k_m = jax.random.split(key, 4)

    input_dim, dense_layers, sex_dcs = 32, [64, 32], 16
    features = jax.random.normal(k_f, (2, input_dim), jnp.float32)
    male = (jax.random.uniform(k_m, (2, 1)) > 0.5).astype(jnp.float32)

    # Config 1: explicit sex classifier branch (sex head from its own trunk).
    params1, raw1 = init_dense_network(
        k_p1, input_dim, dense_layers, sex_dcs, explicit_sex_classifier=[32, 16])
    age1, sex1 = dense_network_forward(params1, features, male, correct_sex=True)
    age1, sex1 = jax.block_until_ready((age1, sex1))
    ref_age1, ref_sex1 = reference_forward(raw1, features, male, correct_sex=True)
    assert age1.shape == (2, 1) and sex1.shape == (2, 1)
    assert bool(jnp.all(jnp.isfinite(age1))) and bool(jnp.all(jnp.isfinite(sex1)))
    assert bool(jnp.allclose(age1, ref_age1, atol=1e-1, rtol=1e-1))
    assert bool(jnp.allclose(sex1, ref_sex1, atol=1e-1, rtol=1e-1))

    # Config 2: no explicit sex classifier (sex head shares the dense trunk).
    params2, raw2 = init_dense_network(
        k_p2, input_dim, dense_layers, sex_dcs, explicit_sex_classifier=None)
    age2, sex2 = dense_network_forward(params2, features, male, correct_sex=True)
    age2, sex2 = jax.block_until_ready((age2, sex2))
    ref_age2, ref_sex2 = reference_forward(raw2, features, male, correct_sex=True)
    assert age2.shape == (2, 1) and sex2.shape == (2, 1)
    assert bool(jnp.all(jnp.isfinite(age2))) and bool(jnp.all(jnp.isfinite(sex2)))
    assert bool(jnp.allclose(age2, ref_age2, atol=1e-1, rtol=1e-1))
    assert bool(jnp.allclose(sex2, ref_sex2, atol=1e-1, rtol=1e-1))

    print("KERNEL_OK")
</pallas_src>

<mosaic_0001>
module attributes {stable_mosaic.version = 11 : i64} {
  func.func @kernel(%arg0: memref<16x128xbf16, #tpu.memory_space<vmem>>, %arg1: memref<16x128xbf16, #tpu.memory_space<vmem>>, %arg2: memref<1x128xf32, #tpu.memory_space<vmem>>, %arg3: memref<256x128xbf16, #tpu.memory_space<vmem>>, %arg4: memref<1x128xf32, #tpu.memory_space<vmem>>, %arg5: memref<128x128xbf16, #tpu.memory_space<vmem>>, %arg6: memref<1x128xf32, #tpu.memory_space<vmem>>, %arg7: memref<128x128xbf16, #tpu.memory_space<vmem>>, %arg8: memref<1x128xf32, #tpu.memory_space<vmem>>, %arg9: memref<128x128xbf16, #tpu.memory_space<vmem>>, %arg10: memref<1x128xf32, #tpu.memory_space<vmem>>, %arg11: memref<128x128xbf16, #tpu.memory_space<vmem>>, %arg12: memref<1x128xf32, #tpu.memory_space<vmem>>, %arg13: memref<128x128xbf16, #tpu.memory_space<vmem>>, %arg14: memref<1x128xf32, #tpu.memory_space<vmem>>, %arg15: memref<128x128xbf16, #tpu.memory_space<vmem>>, %arg16: memref<16x128xf32, #tpu.memory_space<vmem>>, %arg17: memref<16x128xf32, #tpu.memory_space<vmem>>) attributes {dimension_semantics = [], scalar_prefetch = 0 : i64, scratch_operands = 0 : i64, tpu.core_type = #tpu.core_type<tc>} {
    %c0 = arith.constant 0 : index
    %c0_0 = arith.constant 0 : index
    %0 = vector.load %arg0[%c0, %c0_0] : memref<16x128xbf16, #tpu.memory_space<vmem>>, vector<16x128xbf16>
    %c0_1 = arith.constant 0 : index
    %c0_2 = arith.constant 0 : index
    %1 = vector.load %arg13[%c0_1, %c0_2] : memref<128x128xbf16, #tpu.memory_space<vmem>>, vector<128x128xbf16>
    %cst = arith.constant dense<0.000000e+00> : vector<16x128xf32>
    %2 = tpu.matmul %0, %1, %cst {dimension_numbers = #tpu.dot_dimension_numbers<[1], [0], [0], [1], [0, 0, 1, 1], [], []>} : vector<16x128xbf16>, vector<128x128xbf16>, vector<16x128xf32> -> vector<16x128xf32>
    %c0_3 = arith.constant 0 : index
    %c0_4 = arith.constant 0 : index
    %3 = vector.load %arg12[%c0_3, %c0_4] : memref<1x128xf32, #tpu.memory_space<vmem>>, vector<1x128xf32>
    %4 = vector.broadcast %3 : vector<1x128xf32> to vector<16x128xf32>
    %5 = arith.addf %2, %4 : vector<16x128xf32>
    %cst_5 = arith.constant 0.000000e+00 : f32
    %6 = vector.broadcast %cst_5 : f32 to vector<16x128xf32>
    %7 = arith.maximumf %5, %6 : vector<16x128xf32>
    %8 = arith.truncf %7 : vector<16x128xf32> to vector<16x128xbf16>
    %c0_6 = arith.constant 0 : index
    %c0_7 = arith.constant 0 : index
    %9 = vector.load %arg15[%c0_6, %c0_7] : memref<128x128xbf16, #tpu.memory_space<vmem>>, vector<128x128xbf16>
    %cst_8 = arith.constant dense<0.000000e+00> : vector<16x128xf32>
    %10 = tpu.matmul %8, %9, %cst_8 {dimension_numbers = #tpu.dot_dimension_numbers<[1], [0], [0], [1], [0, 0, 1, 1], [], []>} : vector<16x128xbf16>, vector<128x128xbf16>, vector<16x128xf32> -> vector<16x128xf32>
    %c0_9 = arith.constant 0 : index
    %c0_10 = arith.constant 0 : index
    %11 = vector.load %arg14[%c0_9, %c0_10] : memref<1x128xf32, #tpu.memory_space<vmem>>, vector<1x128xf32>
    %12 = vector.broadcast %11 : vector<1x128xf32> to vector<16x128xf32>
    %13 = arith.addf %10, %12 : vector<16x128xf32>
    %cst_11 = arith.constant 0.000000e+00 : f32
    %14 = vector.broadcast %cst_11 : f32 to vector<16x128xf32>
    %15 = arith.maximumf %13, %14 : vector<16x128xf32>
    %16 = arith.truncf %15 : vector<16x128xf32> to vector<16x128xbf16>
    %c0_12 = arith.constant 0 : index
    %c0_13 = arith.constant 0 : index
    %17 = vector.load %arg11[%c0_12, %c0_13] : memref<128x128xbf16, #tpu.memory_space<vmem>>, vector<128x128xbf16>
    %cst_14 = arith.constant dense<0.000000e+00> : vector<16x128xf32>
    %18 = tpu.matmul %16, %17, %cst_14 {dimension_numbers = #tpu.dot_dimension_numbers<[1], [0], [0], [1], [0, 0, 1, 1], [], []>} : vector<16x128xbf16>, vector<128x128xbf16>, vector<16x128xf32> -> vector<16x128xf32>
    %c0_15 = arith.constant 0 : index
    %c0_16 = arith.constant 0 : index
    %19 = vector.load %arg10[%c0_15, %c0_16] : memref<1x128xf32, #tpu.memory_space<vmem>>, vector<1x128xf32>
    %20 = vector.broadcast %19 : vector<1x128xf32> to vector<16x128xf32>
    %21 = arith.addf %18, %20 : vector<16x128xf32>
    %c0_17 = arith.constant 0 : index
    %c0_18 = arith.constant 0 : index
    %22 = vector.load %arg1[%c0_17, %c0_18] : memref<16x128xbf16, #tpu.memory_space<vmem>>, vector<16x128xbf16>
    %c0_19 = arith.constant 0 : index
    %c0_20 = arith.constant 0 : index
    %23 = vector.load %arg9[%c0_19, %c0_20] : memref<128x128xbf16, #tpu.memory_space<vmem>>, vector<128x128xbf16>
    %cst_21 = arith.constant dense<0.000000e+00> : vector<16x128xf32>
    %24 = tpu.matmul %22, %23, %cst_21 {dimension_numbers = #tpu.dot_dimension_numbers<[1], [0], [0], [1], [0, 0, 1, 1], [], []>} : vector<16x128xbf16>, vector<128x128xbf16>, vector<16x128xf32> -> vector<16x128xf32>
    %c0_22 = arith.constant 0 : index
    %c0_23 = arith.constant 0 : index
    %25 = vector.load %arg8[%c0_22, %c0_23] : memref<1x128xf32, #tpu.memory_space<vmem>>, vector<1x128xf32>
    %26 = vector.broadcast %25 : vector<1x128xf32> to vector<16x128xf32>
    %27 = arith.addf %24, %26 : vector<16x128xf32>
    %cst_24 = arith.constant 0.000000e+00 : f32
    %28 = vector.broadcast %cst_24 : f32 to vector<16x128xf32>
    %29 = arith.maximumf %27, %28 : vector<16x128xf32>
    %30 = arith.truncf %29 : vector<16x128xf32> to vector<16x128xbf16>
    %31 = tpu.concatenate %0, %30 in 1 : vector<16x128xbf16>, vector<16x128xbf16> -> vector<16x256xbf16>
    %c0_25 = arith.constant 0 : index
    %c0_26 = arith.constant 0 : index
    %32 = vector.load %arg3[%c0_25, %c0_26] : memref<256x128xbf16, #tpu.memory_space<vmem>>, vector<256x128xbf16>
    %cst_27 = arith.constant dense<0.000000e+00> : vector<16x128xf32>
    %33 = tpu.matmul %31, %32, %cst_27 {dimension_numbers = #tpu.dot_dimension_numbers<[1], [0], [0], [1], [0, 0, 1, 1], [], []>} : vector<16x256xbf16>, vector<256x128xbf16>, vector<16x128xf32> -> vector<16x128xf32>
    %c0_28 = arith.constant 0 : index
    %c0_29 = arith.constant 0 : index
    %34 = vector.load %arg2[%c0_28, %c0_29] : memref<1x128xf32, #tpu.memory_space<vmem>>, vector<1x128xf32>
    %35 = vector.broadcast %34 : vector<1x128xf32> to vector<16x128xf32>
    %36 = arith.addf %33, %35 : vector<16x128xf32>
    %cst_30 = arith.constant 0.000000e+00 : f32
    %37 = vector.broadcast %cst_30 : f32 to vector<16x128xf32>
    %38 = arith.maximumf %36, %37 : vector<16x128xf32>
    %39 = arith.truncf %38 : vector<16x128xf32> to vector<16x128xbf16>
    %c0_31 = arith.constant 0 : index
    %c0_32 = arith.constant 0 : index
    %40 = vector.load %arg5[%c0_31, %c0_32] : memref<128x128xbf16, #tpu.memory_space<vmem>>, vector<128x128xbf16>
    %cst_33 = arith.constant dense<0.000000e+00> : vector<16x128xf32>
    %41 = tpu.matmul %39, %40, %cst_33 {dimension_numbers = #tpu.dot_dimension_numbers<[1], [0], [0], [1], [0, 0, 1, 1], [], []>} : vector<16x128xbf16>, vector<128x128xbf16>, vector<16x128xf32> -> vector<16x128xf32>
    %c0_34 = arith.constant 0 : index
    %c0_35 = arith.constant 0 : index
    %42 = vector.load %arg4[%c0_34, %c0_35] : memref<1x128xf32, #tpu.memory_space<vmem>>, vector<1x128xf32>
    %43 = vector.broadcast %42 : vector<1x128xf32> to vector<16x128xf32>
    %44 = arith.addf %41, %43 : vector<16x128xf32>
    %cst_36 = arith.constant 0.000000e+00 : f32
    %45 = vector.broadcast %cst_36 : f32 to vector<16x128xf32>
    %46 = arith.maximumf %44, %45 : vector<16x128xf32>
    %47 = arith.truncf %46 : vector<16x128xf32> to vector<16x128xbf16>
    %c0_37 = arith.constant 0 : index
    %c0_38 = arith.constant 0 : index
    %48 = vector.load %arg7[%c0_37, %c0_38] : memref<128x128xbf16, #tpu.memory_space<vmem>>, vector<128x128xbf16>
    %cst_39 = arith.constant dense<0.000000e+00> : vector<16x128xf32>
    %49 = tpu.matmul %47, %48, %cst_39 {dimension_numbers = #tpu.dot_dimension_numbers<[1], [0], [0], [1], [0, 0, 1, 1], [], []>} : vector<16x128xbf16>, vector<128x128xbf16>, vector<16x128xf32> -> vector<16x128xf32>
    %c0_40 = arith.constant 0 : index
    %c0_41 = arith.constant 0 : index
    %50 = vector.load %arg6[%c0_40, %c0_41] : memref<1x128xf32, #tpu.memory_space<vmem>>, vector<1x128xf32>
    %51 = vector.broadcast %50 : vector<1x128xf32> to vector<16x128xf32>
    %52 = arith.addf %49, %51 : vector<16x128xf32>
    %c0_42 = arith.constant 0 : index
    %c0_43 = arith.constant 0 : index
    %53 = vector.load %arg16[%c0_42, %c0_43] : memref<16x128xf32, #tpu.memory_space<vmem>>, vector<16x128xf32>
    tpu.vector_store %arg16[%c0_42, %c0_43], %52 {strides = array<i32>} : memref<16x128xf32, #tpu.memory_space<vmem>>, vector<16x128xf32>,
    %c0_44 = arith.constant 0 : index
    %c0_45 = arith.constant 0 : index
    %54 = vector.load %arg17[%c0_44, %c0_45] : memref<16x128xf32, #tpu.memory_space<vmem>>, vector<16x128xf32>
    tpu.vector_store %arg17[%c0_44, %c0_45], %21 {strides = array<i32>} : memref<16x128xf32, #tpu.memory_space<vmem>>, vector<16x128xf32>,
    return
  }
}

</mosaic_0001>

<bundles_post_ra>
// kernel: dense_network_forward.1
= control target key start
LH: loop header
LB: loop body
LE: loop exit
PB: predicated region body
PF: predicated region fallthrough
CT: control target
= control target key end

     0   :  { %s1900_s0 = inlined_call_operand.vmem [shape: bf16[16,128], index: 0, kind: input, shape index: {}]   ;;  %s1901_s1 = inlined_call_operand.vmem [shape: bf16[16,128], index: 1, kind: input, shape index: {}]   ;;  %s1902_s2 = inlined_call_operand.vmem [shape: f32[1,128], index: 2, kind: input, shape index: {}]   ;;  %s1903_s3 = inlined_call_operand.hbm [shape: bf16[256,128], index: 3, kind: input, shape index: {}]   ;;  %s1904_s4 = inlined_call_operand.vmem [shape: f32[1,128], index: 4, kind: input, shape index: {}]   ;;  %s1905_s5 = inlined_call_operand.hbm [shape: bf16[128,128], index: 5, kind: input, shape index: {}]   ;;  %s1906_s6 = inlined_call_operand.vmem [shape: f32[1,128], index: 6, kind: input, shape index: {}]   ;;  %s1907_s7 = inlined_call_operand.hbm [shape: bf16[128,128], index: 7, kind: input, shape index: {}]   ;;  %s1908_s8 = inlined_call_operand.vmem [shape: f32[1,128], index: 8, kind: input, shape index: {}]   ;;  %s1909_s9 = inlined_call_operand.hbm [shape: bf16[128,128], index: 9, kind: input, shape index: {}]   ;;  %s1910_s10 = inlined_call_operand.vmem [shape: f32[1,128], index: 10, kind: input, shape index: {}]   ;;  %s1911_s11 = inlined_call_operand.hbm [shape: bf16[128,128], index: 11, kind: input, shape index: {}]   ;;  %s1912_s12 = inlined_call_operand.hbm [shape: f32[1,128], index: 12, kind: input, shape index: {}]   ;;  %s1913_s13 = inlined_call_operand.vmem [shape: bf16[128,128], index: 13, kind: input, shape index: {}]   ;;  %s1914_s14 = inlined_call_operand.vmem [shape: f32[1,128], index: 14, kind: input, shape index: {}]   ;;  %s1915_s15 = inlined_call_operand.hbm [shape: bf16[128,128], index: 15, kind: input, shape index: {}]   ;;  %s1916_s16 = inlined_call_operand.vmem [shape: f32[16,128], index: 16, kind: output, shape index: {0}]   ;;  %s1917_s17 = inlined_call_operand.vmem [shape: f32[16,128], index: 17, kind: output, shape index: {1}]  }
   0x1   :  { %1918 = sst [smem:[#allocation17_spill]] %s1900_s0 }
   0x2   :  { %1919 = sst [smem:[#allocation18_spill]] %s1901_s1 }
   0x3   :  { %23 = vsyncpa [#allocation3], 0 }
   0x4   :  { %24 = vsyncpa [#allocation5], 0 }
   0x5   :  { %25 = vsyncpa [#allocation8], 0 }
   0x6   :  { %26 = vsyncpa [#allocation11], 0  ;;  %s1552_s24 = smov [#allocation4]   ;;  %s1553_s26 = smov [#allocation7]  }
   0x7   :  { %s52_s25 = sshll.u32 %s1552_s24, 4  ;;  %s80_s27 = sshll.u32 %s1553_s26, 4  ;;  %s53_s25 = int_to_ptr.vmem [resolvable:$true] %s52_s25  ;;  %s1653_s27 = int_to_ptr.vmem [resolvable:$true] %s80_s27 }
   0x8   :  { %s1390_s0 = scalar_lea.hbm %s1905_s5, 1024 }
   0x9   :  { %p1391_p0 = scmp.ne.s32.totalorder %s1905_s5, %s1390_s0  ;;  %p1394_p1 = scmp.lt.u32.totalorder %s1390_s0, %s1905_s5 }
   0xb   :  { %p1396_p2 = pnand %p1394_p1, %p1391_p0 }
   0xd   :  { %1399 = shalt.err (!%p1396_p2)
}
   0xe   :  { %s1400_s20 = scalar_lea.vmem %s53_s25, 1024  ;;  %p1405_p4 = scmp.lt.s32.totalorder %s53_s25, %s53_s25 }
   0xf   :  { %p1401_p3 = scmp.ne.s32.totalorder %s53_s25, %s1400_s20  ;;  %p1406_p5 = scmp.lt.s32.totalorder %s1400_s20, %s1400_s20 }
  0x11   :  { %p1407_p6 = por %p1406_p5, %p1405_p4 }
  0x13   :  { %p1408_p7 = pnand %p1407_p6, %p1401_p3 }
  0x15   :  { %1411 = shalt.err (!%p1408_p7)
}
  0x16   :  { %s1554_s21 = smov 64   ;;  %s1555_s22 = smov 4  }
  0x17   :  { %58 = dma.hbm_to_vmem [thread:$0]  %s1905_s5, 1024, %s53_s25, [#allocation5], %s1554_s21, %s1554_s21, %s1555_s22  }
  0x18   :  { %s1412_s29 = scalar_lea.hbm %s1909_s9, 1024 }
  0x19   :  { %p1413_p8 = scmp.ne.s32.totalorder %s1909_s9, %s1412_s29  ;;  %p1416_p9 = scmp.lt.u32.totalorder %s1412_s29, %s1909_s9 }
  0x1b   :  { %p1418_p10 = pnand %p1416_p9, %p1413_p8 }
  0x1d   :  { %1421 = shalt.err (!%p1418_p10)
}
  0x1e   :  { %s1422_s1 = scalar_lea.vmem %s1653_s27, 1024  ;;  %p1427_p12 = scmp.lt.s32.totalorder %s1653_s27, %s1653_s27 }
  0x1f   :  { %p1423_p11 = scmp.ne.s32.totalorder %s1653_s27, %s1422_s1  ;;  %p1428_p13 = scmp.lt.s32.totalorder %s1422_s1, %s1422_s1 }
  0x21   :  { %p1429_p0 = por %p1428_p13, %p1427_p12 }
  0x23   :  { %p1430_p1 = pnand %p1429_p0, %p1423_p11 }
  0x25   :  { %1433 = shalt.err (!%p1430_p1)
}
  0x26   :  { %86 = dma.hbm_to_vmem [thread:$0]  %s1909_s9, 1024, %s1653_s27, [#allocation8], %s1554_s21, %s1554_s21, %s1555_s22  }
  0x27   :  { %s1556_s20 = smov [#allocation10]   ;;  %s1557_s24 = smov [#allocation2]  }
  0x28   :  { %s107_s23 = sshll.u32 %s1556_s20, 4  ;;  %s38_s26 = sshll.u32 %s1557_s24, 4  ;;  %s108_s23 = int_to_ptr.vmem [resolvable:$true] %s107_s23  ;;  %s1690_s26 = int_to_ptr.vmem [resolvable:$true] %s38_s26 }
  0x29   :  { %s1434_s0 = scalar_lea.hbm %s1912_s12, 16 }
  0x2a   :  { %p1435_p2 = scmp.ne.s32.totalorder %s1912_s12, %s1434_s0  ;;  %p1438_p3 = scmp.lt.u32.totalorder %s1434_s0, %s1912_s12 }
  0x2c   :  { %p1440_p4 = pnand %p1438_p3, %p1435_p2 }
  0x2e   :  { %1443 = shalt.err (!%p1440_p4)
}
  0x2f   :  { %s1444_s9 = scalar_lea.vmem %s108_s23, 16  ;;  %s1448_s27 = scalar_lea.vmem %s108_s23, 32 }
  0x30   :  { %p1445_p5 = scmp.ne.s32.totalorder %s108_s23, %s1444_s9  ;;  %p1449_p6 = scmp.lt.s32.totalorder %s108_s23, %s108_s23 }
  0x31   :  { %p1450_p7 = scmp.lt.s32.totalorder %s1448_s27, %s1444_s9 }
  0x33   :  { %p1451_p8 = por %p1450_p7, %p1449_p6 }
  0x35   :  { %p1452_p9 = pnand %p1451_p8, %p1445_p5 }
  0x37   :  { %1455 = shalt.err (!%p1452_p9)
}
  0x38   :  { %110 = dma.hbm_to_vmem [thread:$0]  %s1912_s12, 16, %s108_s23, [#allocation11]  }
  0x39   :  { %s1456_s28 = scalar_lea.hbm %s1903_s3, 2048 }
  0x3a   :  { %p1457_p10 = scmp.ne.s32.totalorder %s1903_s3, %s1456_s28  ;;  %p1460_p11 = scmp.lt.u32.totalorder %s1456_s28, %s1903_s3 }
  0x3c   :  { %p1462_p12 = pnand %p1460_p11, %p1457_p10 }
  0x3e   :  { %1465 = shalt.err (!%p1462_p12)
}
  0x3f   :  { %s1466_s19 = scalar_lea.vmem %s1690_s26, 2048  ;;  %p1471_p0 = scmp.lt.s32.totalorder %s1690_s26, %s1690_s26 }
  0x40   :  { %p1467_p13 = scmp.ne.s32.totalorder %s1690_s26, %s1466_s19  ;;  %p1472_p1 = scmp.lt.s32.totalorder %s1466_s19, %s1466_s19 }
  0x42   :  { %p1473_p2 = por %p1472_p1, %p1471_p0 }
  0x44   :  { %p1474_p3 = pnand %p1473_p2, %p1467_p13 }
  0x46   :  { %1477 = shalt.err (!%p1474_p3)
}
  0x47   :  { %44 = dma.hbm_to_vmem [thread:$0]  %s1903_s3, 2048, %s1690_s26, [#allocation3], %s1554_s21, %s1554_s21, %s1555_s22  }
  0x48   :  { %s1558_s1 = smov [#allocation6]   ;;  %s1559_s27 = smov [#allocation9]  }
  0x49   :  { %s66_s9 = sshll.u32 %s1558_s1, 4  ;;  %s94_s5 = sshll.u32 %s1559_s27, 4  ;;  %s67_s9 = int_to_ptr.vmem [resolvable:$true] %s66_s9  ;;  %s1724_s5 = int_to_ptr.vmem [resolvable:$true] %s94_s5 }
  0x4a   :  { %s1478_s24 = scalar_lea.hbm %s1907_s7, 1024 }
  0x4b   :  { %p1479_p4 = scmp.ne.s32.totalorder %s1907_s7, %s1478_s24  ;;  %p1482_p5 = scmp.lt.u32.totalorder %s1478_s24, %s1907_s7 }
  0x4d   :  { %p1484_p6 = pnand %p1482_p5, %p1479_p4 }
  0x4f   :  { %1487 = shalt.err (!%p1484_p6)
}
  0x50   :  { %s1488_s3 = scalar_lea.vmem %s67_s9, 1024  ;;  %p1493_p8 = scmp.lt.s32.totalorder %s67_s9, %s67_s9 }
  0x51   :  { %p1489_p7 = scmp.ne.s32.totalorder %s67_s9, %s1488_s3  ;;  %p1494_p9 = scmp.lt.s32.totalorder %s1488_s3, %s1488_s3 }
  0x53   :  { %p1495_p10 = por %p1494_p9, %p1493_p8 }
  0x55   :  { %p1496_p11 = pnand %p1495_p10, %p1489_p7 }
  0x57   :  { %1499 = shalt.err (!%p1496_p11)
}
  0x58   :  { %72 = dma.hbm_to_vmem [thread:$0]  %s1907_s7, 1024, %s67_s9, [#allocation5], %s1554_s21, %s1554_s21, %s1555_s22  }
  0x59   :  { %s1500_s23 = scalar_lea.hbm %s1911_s11, 1024 }
  0x5a   :  { %p1501_p12 = scmp.ne.s32.totalorder %s1911_s11, %s1500_s23  ;;  %p1504_p13 = scmp.lt.u32.totalorder %s1500_s23, %s1911_s11 }
  0x5c   :  { %p1506_p0 = pnand %p1504_p13, %p1501_p12 }
  0x5e   :  { %1509 = shalt.err (!%p1506_p0)
}
  0x5f   :  { %s1510_s24 = scalar_lea.vmem %s1724_s5, 1024  ;;  %p1515_p2 = scmp.lt.s32.totalorder %s1724_s5, %s1724_s5 }
  0x60   :  { %p1511_p1 = scmp.ne.s32.totalorder %s1724_s5, %s1510_s24  ;;  %p1516_p3 = scmp.lt.s32.totalorder %s1510_s24, %s1510_s24 }
  0x62   :  { %p1517_p4 = por %p1516_p3, %p1515_p2 }
  0x64   :  { %p1518_p5 = pnand %p1517_p4, %p1511_p1 }
  0x66   :  { %1521 = shalt.err (!%p1518_p5)
}
  0x67   :  { %100 = dma.hbm_to_vmem [thread:$0]  %s1911_s11, 1024, %s1724_s5, [#allocation8], %s1554_s21, %s1554_s21, %s1555_s22  }
  0x68   :  { %s1560_s28 = smov [#allocation12]   ;;  %s1522_s3 = scalar_lea.hbm %s1915_s15, 1024 }
  0x69   :  { %s120_s29 = sshll.u32 %s1560_s28, 4  ;;  %p1523_p6 = scmp.ne.s32.totalorder %s1915_s15, %s1522_s3  ;;  %s121_s29 = int_to_ptr.vmem [resolvable:$true] %s120_s29 }
  0x6a   :  { %p1526_p7 = scmp.lt.u32.totalorder %s1522_s3, %s1915_s15 }
  0x6c   :  { %p1528_p8 = pnand %p1526_p7, %p1523_p6 }
  0x6e   :  { %1531 = shalt.err (!%p1528_p8)
}
  0x6f   :  { %s1532_s23 = scalar_lea.vmem %s121_s29, 1024  ;;  %p1537_p10 = scmp.lt.s32.totalorder %s121_s29, %s121_s29 }
  0x70   :  { %p1533_p9 = scmp.ne.s32.totalorder %s121_s29, %s1532_s23  ;;  %p1538_p11 = scmp.lt.s32.totalorder %s1532_s23, %s1532_s23 }
  0x72   :  { %p1539_p12 = por %p1538_p11, %p1537_p10 }
  0x74   :  { %p1540_p13 = pnand %p1539_p12, %p1533_p9 }
  0x76   :  { %1543 = shalt.err (!%p1540_p13)
}
  0x77   :  { %126 = dma.hbm_to_vmem [thread:$0]  %s1915_s15, 1024, %s121_s29, [#allocation11], %s1554_s21, %s1554_s21, %s1555_s22  }
  0x78   :  { %1544 = dma.done.wait [#allocation3], 2048  }
  0x79   :  { %1545 = vsyncadd [#allocation3], 4294965248 }
  0x7a   :  { %1546 = dma.done.wait [#allocation5], 2048  }
  0x7b   :  { %1547 = vsyncadd [#allocation5], 4294965248 }
  0x7c   :  { %1548 = dma.done.wait [#allocation8], 2048  }
  0x7d   :  { %1549 = vsyncadd [#allocation8], 4294965248 }
  0x7e   :  { %1550 = dma.done.wait [#allocation11], 1040  }
  0x7f   :  { %1551 = vsyncadd [#allocation11], 4294966256  ;;  %v1561_v0 = vmov 0.0   ;;  %vm1562_vm0 = vmmov 0   ;;  %v1324_v1 = vld [vmem:[%s1913_s13] sm:$0xff]   ;;  %v1325_v2 = vld [vmem:[%s1913_s13 + $0x8] sm:$0xff]  }
  0x80   :  { %1193 = vmatprep.subr.bf16.mxu0 %v1561_v0  ;;  %1209 = vmatprep.mubr.msk.bf16.mxu0 %vm1562_vm0, %v1561_v0  ;;  %v1326_v3 = vld [vmem:[%s1913_s13 + $0x10] sm:$0xff]   ;;  %v1333_v4 = vld [vmem:[#allocation12] sm:$0xff]   ;;  %v1327_v5 = vld [vmem:[%s1913_s13 + $0x18] sm:$0xff]   ;;  %s1920_s12 = sld [smem:[#allocation17_spill]]  ;;  %s1921_s11 = sld [smem:[#allocation18_spill]] }
  0x81   :  { %1213 = vmatprep.subr.bf16.mxu1 %v1561_v0  ;;  %1229 = vmatprep.mubr.msk.bf16.mxu1 %vm1562_vm0, %v1561_v0  ;;  %v1334_v6 = vld [vmem:[#allocation12 + $0x8] sm:$0xff]   ;;  %v1328_v7 = vld [vmem:[%s1913_s13 + $0x20] sm:$0xff]   ;;  %v1335_v8 = vld [vmem:[#allocation12 + $0x10] sm:$0xff]  }
  0x82   :  { %1194 = vmatpush3.bf16.msra.mxu0 %v1324_v1  ;;  %1214 = vmatpush3.bf16.msra.mxu1 %v1333_v4  ;;  %v1329_v9 = vld [vmem:[%s1913_s13 + $0x28] sm:$0xff]   ;;  %v1336_v10 = vld [vmem:[#allocation12 + $0x18] sm:$0xff]   ;;  %v1330_v11 = vld [vmem:[%s1913_s13 + $0x30] sm:$0xff]  }
  0x83   :  { %1195 = vmatprep.subr.bf16.mxu0 %v1561_v0  ;;  %1215 = vmatprep.subr.bf16.mxu1 %v1561_v0  ;;  %v1337_v12 = vld [vmem:[#allocation12 + $0x20] sm:$0xff]   ;;  %v1331_v13 = vld [vmem:[%s1913_s13 + $0x38] sm:$0xff]   ;;  %v1338_v14 = vld [vmem:[#allocation12 + $0x28] sm:$0xff]  }
  0x84   :  { %v1339_v16 = vld [vmem:[#allocation12 + $0x30] sm:$0xff]   ;;  %v1340_v17 = vld [vmem:[#allocation12 + $0x38] sm:$0xff]   ;;  %v1351_v19 = vld [vmem:[#allocation9 + $0x8] sm:$0xff]  }
  0x85   :  { %v1350_v18 = vld [vmem:[#allocation9] sm:$0xff]   ;;  %v1352_v20 = vld [vmem:[#allocation9 + $0x10] sm:$0xff]   ;;  %v1353_v21 = vld [vmem:[#allocation9 + $0x18] sm:$0xff]  }
  0x86   :  { %1196 = vmatpush3.bf16.msra.mxu0 %v1325_v2  ;;  %1216 = vmatpush3.bf16.msra.mxu1 %v1334_v6  ;;  %v1820_v15 = vld [vmem:[%s1920_s12] sm:$0xff]   ;;  %v1355_v23 = vld [vmem:[#allocation9 + $0x28] sm:$0xff]   ;;  %v1343_v36 = vld [vmem:[#allocation7 + $0x10] sm:$0xff]  }
  0x87   :  { %1197 = vmatprep.subr.bf16.mxu0 %v1561_v0  ;;  %1217 = vmatprep.subr.bf16.mxu1 %v1561_v0  ;;  %v1354_v22 = vld [vmem:[#allocation9 + $0x20] sm:$0xff]   ;;  %v1342_v35 = vld [vmem:[#allocation7 + $0x8] sm:$0xff]   ;;  %v1344_v37 = vld [vmem:[#allocation7 + $0x18] sm:$0xff]  }
  0x88   :  { %v1044_v24 = vld [vmem:[#allocation10] ss:$0 sm:$0xff]  ;;  %v1346_v39 = vld [vmem:[#allocation7 + $0x28] sm:$0xff]   ;;  %v1347_v40 = vld [vmem:[#allocation7 + $0x30] sm:$0xff]  }
  0x89   :  { %v1341_v33 = vld [vmem:[#allocation7] sm:$0xff]   ;;  %v1348_v41 = vld [vmem:[#allocation7 + $0x38] sm:$0xff]   ;;  %v1356_v43 = vld [vmem:[#allocation9 + $0x30] sm:$0xff]  }
  0x8a   :  { %1198 = vmatpush3.bf16.msra.mxu0 %v1326_v3  ;;  %1218 = vmatpush3.bf16.msra.mxu1 %v1335_v8  ;;  %v1345_v38 = vld [vmem:[#allocation7 + $0x20] sm:$0xff]   ;;  %v1357_v44 = vld [vmem:[#allocation9 + $0x38] sm:$0xff]   ;;  %v1360_v57 = vld [vmem:[#allocation2 + $0x48] sm:$0xff]  }
  0x8b   :  { %1199 = vmatprep.subr.bf16.mxu0 %v1561_v0  ;;  %1219 = vmatprep.subr.bf16.mxu1 %v1561_v0  ;;  %v1349_v42 = vld [vmem:[%s1921_s11] sm:$0xff]   ;;  %v1361_v58 = vld [vmem:[#allocation2 + $0x8] sm:$0xff]   ;;  %v1362_v59 = vld [vmem:[#allocation2 + $0x50] sm:$0xff]  }
  0x8c   :  { %v1358_v45 = vld [vmem:[#allocation2 + $0x40] sm:$0xff]   ;;  %v1363_v60 = vld [vmem:[#allocation2 + $0x10] sm:$0xff]   ;;  %v1364_v61 = vld [vmem:[#allocation2 + $0x58] sm:$0xff]  }
  0x8d   :  { %v1054_v46 = vld [vmem:[%s1914_s14] ss:$0 sm:$0xff]  ;;  %v1365_v62 = vld [vmem:[#allocation2 + $0x18] sm:$0xff]   ;;  %v1368_v2 = vld [vmem:[#allocation2 + $0x68] sm:$0xff]  }
  0x8e   :  { %1200 = vmatpush3.bf16.msra.mxu0 %v1327_v5  ;;  %1220 = vmatpush3.bf16.msra.mxu1 %v1336_v10  ;;  %v1359_v55 = vld [vmem:[#allocation2] sm:$0xff]   ;;  %v1369_v3 = vld [vmem:[#allocation2 + $0x28] sm:$0xff]   ;;  %v1370_v4 = vld [vmem:[#allocation2 + $0x70] sm:$0xff]  }
  0x8f   :  { %1201 = vmatprep.subr.bf16.mxu0 %v1561_v0  ;;  %1221 = vmatprep.subr.bf16.mxu1 %v1561_v0  ;;  %v1366_v63 = vld [vmem:[#allocation2 + $0x60] sm:$0xff]   ;;  %v1371_v6 = vld [vmem:[#allocation2 + $0x30] sm:$0xff]  }
  0x90   :  { %v1367_v1 = vld [vmem:[#allocation2 + $0x20] sm:$0xff]  }
  0x91   :  { %v1072_v5 = vld [vmem:[%s1908_s8] ss:$0 sm:$0xff] }
  0x92   :  { %1202 = vmatpush3.bf16.msra.mxu0 %v1328_v7  ;;  %1222 = vmatpush3.bf16.msra.mxu1 %v1337_v12  ;;  %v1372_v7 = vld [vmem:[#allocation2 + $0x78] sm:$0xff]  }
  0x93   :  { %1203 = vmatprep.subr.bf16.mxu0 %v1561_v0  ;;  %1223 = vmatprep.subr.bf16.mxu1 %v1561_v0  ;;  %v1373_v12 = vld [vmem:[#allocation2 + $0x38] sm:$0xff]  }
  0x96   :  { %1204 = vmatpush3.bf16.msra.mxu0 %v1329_v9  ;;  %1224 = vmatpush3.bf16.msra.mxu1 %v1338_v14 }
  0x97   :  { %1205 = vmatprep.subr.bf16.mxu0 %v1561_v0  ;;  %1225 = vmatprep.subr.bf16.mxu1 %v1561_v0 }
  0x9a   :  { %1206 = vmatpush3.bf16.msra.mxu0 %v1330_v11  ;;  %1226 = vmatpush3.bf16.msra.mxu1 %v1339_v16 }
  0x9b   :  { %1207 = vmatprep.subr.bf16.mxu0 %v1561_v0  ;;  %1227 = vmatprep.subr.bf16.mxu1 %v1561_v0 }
  0x9e   :  { %1208 = vmatpush3.bf16.msra.mxu0 %v1331_v13  ;;  %1228 = vmatpush3.bf16.msra.mxu1 %v1340_v17 }
  0x9f   :  { %1233 = vmatprep.subr.bf16.mxu0 %v1561_v0  ;;  %1253 = vmatprep.subr.bf16.mxu1 %v1561_v0 }
  0xa1   :  { %1210 = vmatmul.mubr.bf16.vlgmr.msra.gmra.mrb[0].mxu0 %v1820_v15 }
  0xa2   :  { %1249 = vmatprep.mubr.msk.bf16.mxu0 %vm1562_vm0, %v1561_v0  ;;  %1234 = vmatpush3.bf16.msra.mxu0 %v1350_v18 }
  0xa3   :  { %1235 = vmatprep.subr.bf16.mxu0 %v1561_v0 }
  0xa6   :  { %1236 = vmatpush3.bf16.msra.mxu0 %v1351_v19  ;;  %v1374_v19 = vld [vmem:[#allocation4] sm:$0xff]  }
  0xa7   :  { %1237 = vmatprep.subr.bf16.mxu0 %v1561_v0 }
  0xaa   :  { %1238 = vmatpush3.bf16.msra.mxu0 %v1352_v20  ;;  %v1375_v20 = vld [vmem:[#allocation4 + $0x8] sm:$0xff]  }
  0xab   :  { %1239 = vmatprep.subr.bf16.mxu0 %v1561_v0 }
  0xae   :  { %1240 = vmatpush3.bf16.msra.mxu0 %v1353_v21  ;;  %v1376_v21 = vld [vmem:[#allocation4 + $0x10] sm:$0xff]  }
  0xaf   :  { %1241 = vmatprep.subr.bf16.mxu0 %v1561_v0 }
  0xb2   :  { %1242 = vmatpush3.bf16.msra.mxu0 %v1354_v22  ;;  %v1377_v22 = vld [vmem:[#allocation4 + $0x18] sm:$0xff]  }
  0xb3   :  { %1243 = vmatprep.subr.bf16.mxu0 %v1561_v0 }
  0xb6   :  { %1244 = vmatpush3.bf16.msra.mxu0 %v1355_v23  ;;  %v1378_v23 = vld [vmem:[#allocation4 + $0x20] sm:$0xff]  }
  0xb7   :  { %1245 = vmatprep.subr.bf16.mxu0 %v1561_v0 }
  0xba   :  { %1246 = vmatpush3.bf16.msra.mxu0 %v1356_v43 }
  0xbb   :  { %1247 = vmatprep.subr.bf16.mxu0 %v1561_v0 }
  0xbe   :  { %1248 = vmatpush3.bf16.msra.mxu0 %v1357_v44 }
  0xbf   :  { %1153 = vmatprep.subr.bf16.mxu0 %v1358_v45 }
 0x174   :  { %v262_v25 = vpop.f32.mrb[0].mxu0 }
 0x175   :  { %v263_v26 = vadd.f32 %v1044_v24, %v262_v25  ;;  %v1211_v27 = vpop.f32.mrb[1].mxu0  ;;  %v1381_v25 = vld [vmem:[#allocation4 + $0x38] sm:$0xff]  }
 0x176   :  { %v265_v28 = vpop.f32.mrb[2].mxu0  ;;  %v1383_v27 = vld [vmem:[#allocation6 + $0x8] sm:$0xff]  }
 0x177   :  { %v266_v29 = vadd.f32 %v1044_v24, %v265_v28  ;;  %v1212_v30 = vpop.f32.mrb[3].mxu0  ;;  %v269_v31 = vmax.f32 %v263_v26, 0.0  ;;  %v1380_v24 = vld [vmem:[#allocation4 + $0x30] sm:$0xff]   ;;  %v1382_v26 = vld [vmem:[#allocation6] sm:$0xff]  }
 0x178   :  { %v1384_v28 = vld [vmem:[#allocation6 + $0x10] sm:$0xff]   ;;  %v1386_v30 = vld [vmem:[#allocation6 + $0x20] sm:$0xff]  }
 0x179   :  { %v270_v32 = vmax.f32 %v266_v29, 0.0  ;;  %v1385_v29 = vld [vmem:[#allocation6 + $0x18] sm:$0xff]  }
 0x17b   :  { %v271_v34 = vpack.c.bf16 %v270_v32, %v269_v31  ;;  %v1387_v31 = vld [vmem:[#allocation6 + $0x28] sm:$0xff]   ;;  %v1063_v32 = vld [vmem:[%s1910_s10] ss:$0 sm:$0xff] }
 0x17d   :  { %1230 = vmatmul.mubr.bf16.vlgmr.msra.gmra.mrb[0].mxu1 %v271_v34 }
 0x17e   :  { %1254 = vmatpush3.bf16.msra.mxu1 %v1341_v33  ;;  %1269 = vmatprep.mubr.msk.bf16.mxu1 %vm1562_vm0, %v1561_v0 }
 0x17f   :  { %1255 = vmatprep.subr.bf16.mxu1 %v1561_v0 }
 0x182   :  { %1256 = vmatpush3.bf16.msra.mxu1 %v1342_v35 }
 0x183   :  { %1257 = vmatprep.subr.bf16.mxu1 %v1561_v0 }
 0x186   :  { %1258 = vmatpush3.bf16.msra.mxu1 %v1343_v36 }
 0x187   :  { %1259 = vmatprep.subr.bf16.mxu1 %v1561_v0 }
 0x18a   :  { %1260 = vmatpush3.bf16.msra.mxu1 %v1344_v37 }
 0x18b   :  { %1261 = vmatprep.subr.bf16.mxu1 %v1561_v0 }
 0x18e   :  { %1262 = vmatpush3.bf16.msra.mxu1 %v1345_v38 }
 0x18f   :  { %1263 = vmatprep.subr.bf16.mxu1 %v1561_v0 }
 0x192   :  { %1264 = vmatpush3.bf16.msra.mxu1 %v1346_v39 }
 0x193   :  { %1265 = vmatprep.subr.bf16.mxu1 %v1561_v0 }
 0x196   :  { %1266 = vmatpush3.bf16.msra.mxu1 %v1347_v40  ;;  %v1082_v40 = vld [vmem:[%s1902_s2] ss:$0 sm:$0xff] }
 0x197   :  { %1267 = vmatprep.subr.bf16.mxu1 %v1561_v0 }
 0x19a   :  { %1268 = vmatpush3.bf16.msra.mxu1 %v1348_v41 }
 0x19b   :  { %1273 = vmatprep.subr.bf16.mxu1 %v1561_v0 }
 0x19d   :  { %1270 = vmatmul.mubr.bf16.vlgmr.msra.gmra.mrb[4].mxu1 %v1349_v42 }
 0x19e   :  { %1289 = vmatprep.mubr.msk.bf16.mxu1 %vm1562_vm0, %v1561_v0  ;;  %1274 = vmatpush3.bf16.msra.mxu1 %v1374_v19 }
 0x19f   :  { %1275 = vmatprep.subr.bf16.mxu1 %v1561_v0 }
 0x1a2   :  { %1276 = vmatpush3.bf16.msra.mxu1 %v1375_v20 }
 0x1a3   :  { %1277 = vmatprep.subr.bf16.mxu1 %v1561_v0 }
 0x1a6   :  { %1278 = vmatpush3.bf16.msra.mxu1 %v1376_v21 }
 0x1a7   :  { %1279 = vmatprep.subr.bf16.mxu1 %v1561_v0 }
 0x1aa   :  { %1280 = vmatpush3.bf16.msra.mxu1 %v1377_v22 }
 0x1ab   :  { %1281 = vmatprep.subr.bf16.mxu1 %v1561_v0 }
 0x1ae   :  { %1282 = vmatpush3.bf16.msra.mxu1 %v1378_v23 }
 0x1af   :  { %1283 = vmatprep.subr.bf16.mxu1 %v1561_v0 }
 0x250   :  { %v377_v47 = vpop.f32.mrb[0].mxu1 }
 0x251   :  { %v378_v48 = vadd.f32 %v1054_v46, %v377_v47  ;;  %v1231_v49 = vpop.f32.mrb[1].mxu1 }
 0x252   :  { %v380_v50 = vpop.f32.mrb[2].mxu1 }
 0x253   :  { %v381_v51 = vadd.f32 %v1054_v46, %v380_v50  ;;  %v1232_v52 = vpop.f32.mrb[3].mxu1  ;;  %v384_v53 = vmax.f32 %v378_v48, 0.0 }
 0x254   :  { %v1389_v52 = vld [vmem:[#allocation6 + $0x38] sm:$0xff]  }
 0x255   :  { %v385_v54 = vmax.f32 %v381_v51, 0.0  ;;  %v1388_v51 = vld [vmem:[#allocation6 + $0x30] sm:$0xff]  }
 0x257   :  { %v386_v56 = vpack.c.bf16 %v385_v54, %v384_v53  ;;  %v1099_v53 = vld [vmem:[%s1904_s4] ss:$0 sm:$0xff] }
 0x259   :  { %1250 = vmatmul.mubr.bf16.vlgmr.msra.gmra.mrb[4].mxu0 %v386_v56 }
 0x25a   :  { %1154 = vmatpush3.bf16.msra.mxu0 %v1359_v55 }
 0x25b   :  { %1155 = vmatprep.subr.bf16.mxu0 %v1360_v57 }
 0x25e   :  { %1156 = vmatpush3.bf16.msra.mxu0 %v1361_v58 }
 0x25f   :  { %1157 = vmatprep.subr.bf16.mxu0 %v1362_v59 }
 0x262   :  { %1158 = vmatpush3.bf16.msra.mxu0 %v1363_v60 }
 0x263   :  { %1159 = vmatprep.subr.bf16.mxu0 %v1364_v61 }
 0x266   :  { %1160 = vmatpush3.bf16.msra.mxu0 %v1365_v62 }
 0x267   :  { %1161 = vmatprep.subr.bf16.mxu0 %v1366_v63 }
 0x26a   :  { %1162 = vmatpush3.bf16.msra.mxu0 %v1367_v1 }
 0x26b   :  { %1163 = vmatprep.subr.bf16.mxu0 %v1368_v2 }
 0x26e   :  { %1164 = vmatpush3.bf16.msra.mxu0 %v1369_v3 }
 0x26f   :  { %1165 = vmatprep.subr.bf16.mxu0 %v1370_v4 }
 0x270   :  { %v612_v8 = vpop.f32.mrb[4].mxu1 }
 0x271   :  { %v613_v9 = vadd.f32 %v1072_v5, %v612_v8  ;;  %v1271_v10 = vpop.f32.mrb[5].mxu1 }
 0x272   :  { %v615_v11 = vpop.f32.mrb[6].mxu1  ;;  %1166 = vmatpush3.bf16.msra.mxu0 %v1371_v6 }
 0x273   :  { %v616_v13 = vadd.f32 %v1072_v5, %v615_v11  ;;  %v1272_v14 = vpop.f32.mrb[7].mxu1  ;;  %1167 = vmatprep.subr.bf16.mxu0 %v1372_v7  ;;  %v619_v16 = vmax.f32 %v613_v9, 0.0 }
 0x275   :  { %v620_v17 = vmax.f32 %v616_v13, 0.0 }
 0x276   :  { %1168 = vmatpush3.bf16.msra.mxu0 %v1373_v12 }
 0x277   :  { %v621_v18 = vpack.c.bf16 %v620_v17, %v619_v16  ;;  %1293 = vmatprep.subr.bf16.mxu0 %v1561_v0 }
 0x279   :  { %789 = vmatprep.mubr.bf16.mxu0 %v621_v18 }
 0x27a   :  { %790 = vmatmul.mubr.bf16.vlgmr.msra.gmra.mrb[8].mxu0 %v1820_v15  ;;  %v1379_v15 = vld [vmem:[#allocation4 + $0x28] sm:$0xff]  }
 0x27b   :  { %1309 = vmatprep.mubr.msk.bf16.mxu0 %vm1562_vm0, %v1561_v0  ;;  %1284 = vmatpush3.bf16.msra.mxu1 %v1379_v15 }
 0x27c   :  { %1285 = vmatprep.subr.bf16.mxu1 %v1561_v0  ;;  %1294 = vmatpush3.bf16.msra.mxu0 %v1382_v26 }
 0x27d   :  { %1295 = vmatprep.subr.bf16.mxu0 %v1561_v0 }
 0x27f   :  { %1286 = vmatpush3.bf16.msra.mxu1 %v1380_v24 }
 0x280   :  { %1287 = vmatprep.subr.bf16.mxu1 %v1561_v0  ;;  %1296 = vmatpush3.bf16.msra.mxu0 %v1383_v27 }
 0x281   :  { %1297 = vmatprep.subr.bf16.mxu0 %v1561_v0 }
 0x283   :  { %1288 = vmatpush3.bf16.msra.mxu1 %v1381_v25 }
 0x284   :  { %1298 = vmatpush3.bf16.msra.mxu0 %v1384_v28 }
 0x285   :  { %1299 = vmatprep.subr.bf16.mxu0 %v1561_v0 }
 0x288   :  { %1300 = vmatpush3.bf16.msra.mxu0 %v1385_v29 }
 0x289   :  { %1301 = vmatprep.subr.bf16.mxu0 %v1561_v0 }
 0x28c   :  { %1302 = vmatpush3.bf16.msra.mxu0 %v1386_v30 }
 0x28d   :  { %1303 = vmatprep.subr.bf16.mxu0 %v1561_v0 }
 0x290   :  { %1304 = vmatpush3.bf16.msra.mxu0 %v1387_v31 }
 0x291   :  { %1305 = vmatprep.subr.bf16.mxu0 %v1561_v0 }
 0x294   :  { %1306 = vmatpush3.bf16.msra.mxu0 %v1388_v51 }
 0x295   :  { %1307 = vmatprep.subr.bf16.mxu0 %v1561_v0  ;;  %v1108_v0 = vld [vmem:[%s1906_s6] ss:$0 sm:$0xff] }
 0x298   :  { %1308 = vmatpush3.bf16.msra.mxu0 %v1389_v52 }
 0x32c   :  { %v492_v33 = vpop.f32.mrb[4].mxu0 }
 0x32d   :  { %v493_v34 = vadd.f32 %v1063_v32, %v492_v33  ;;  %v1251_v35 = vpop.f32.mrb[5].mxu0 }
 0x32e   :  { %v495_v36 = vpop.f32.mrb[6].mxu0 }
 0x32f   :  { %1030 = vst [vmem:[%s1917_s17] sm:$0xff] %v493_v34  ;;  %v496_v37 = vadd.f32 %v1063_v32, %v495_v36  ;;  %v1252_v38 = vpop.f32.mrb[7].mxu0 }
 0x331   :  { %1031 = vst [vmem:[%s1917_s17 + $0x8] sm:$0xff] %v496_v37 }
 0x34d   :  { %v1169_v39 = vpop.f32.mrb[8].mxu0 }
 0x34e   :  { %v1170_v41 = vpop.f32.mrb[9].mxu0 }
 0x34f   :  { %v1171_v42 = vadd.f32 %v1170_v41, %v1169_v39  ;;  %v1172_v43 = vpop.f32.mrb[10].mxu0 }
 0x350   :  { %v1173_v44 = vpop.f32.mrb[11].mxu0 }
 0x351   :  { %v792_v45 = vadd.f32 %v1171_v42, %v1082_v40  ;;  %v1174_v46 = vadd.f32 %v1173_v44, %v1172_v43 }
 0x353   :  { %v795_v47 = vadd.f32 %v1174_v46, %v1082_v40  ;;  %v798_v48 = vmax.f32 %v792_v45, 0.0 }
 0x355   :  { %v799_v49 = vmax.f32 %v795_v47, 0.0 }
 0x357   :  { %v800_v50 = vpack.c.bf16 %v799_v49, %v798_v48 }
 0x359   :  { %1290 = vmatmul.mubr.bf16.vlgmr.msra.gmra.mrb[8].mxu1 %v800_v50 }
 0x42c   :  { %v906_v54 = vpop.f32.mrb[8].mxu1 }
 0x42d   :  { %v907_v55 = vadd.f32 %v1099_v53, %v906_v54  ;;  %v1291_v56 = vpop.f32.mrb[9].mxu1 }
 0x42e   :  { %v909_v57 = vpop.f32.mrb[10].mxu1 }
 0x42f   :  { %v910_v58 = vadd.f32 %v1099_v53, %v909_v57  ;;  %v1292_v59 = vpop.f32.mrb[11].mxu1  ;;  %v913_v60 = vmax.f32 %v907_v55, 0.0 }
 0x431   :  { %v914_v61 = vmax.f32 %v910_v58, 0.0 }
 0x433   :  { %v915_v62 = vpack.c.bf16 %v914_v61, %v913_v60 }
 0x435   :  { %1310 = vmatmul.mubr.bf16.vlgmr.msra.gmra.mrb[12].mxu0 %v915_v62 }
 0x508   :  { %v1021_v63 = vpop.f32.mrb[12].mxu0 }
 0x509   :  { %v1022_v1 = vadd.f32 %v1108_v0, %v1021_v63  ;;  %v1311_v2 = vpop.f32.mrb[13].mxu0 }
 0x50a   :  { %v1024_v3 = vpop.f32.mrb[14].mxu0 }
 0x50b   :  { %1028 = vst [vmem:[%s1916_s16] sm:$0xff] %v1022_v1  ;;  %v1025_v4 = vadd.f32 %v1108_v0, %v1024_v3  ;;  %v1312_v5 = vpop.f32.mrb[15].mxu0 }
 0x50d   :  { %1029 = vst [vmem:[%s1916_s16 + $0x8] sm:$0xff] %v1025_v4 }
 0x50e   :  { %1040 = vsyncpa [#allocation3], 1 }
 0x50f   :  { %1041 = vsyncpa [#allocation5], 1 }
 0x510   :  { %1042 = vsyncpa [#allocation8], 1 }
 0x511   :  { %1043 = vsyncpa [#allocation11], 1 }

</bundles_post_ra>
